<compile_context>
chip_gen: v7x
topology: tpu7x:2x2x1
jax: 0.10.0
libtpu: 0.0.40
codegen_flags: <defaults>
</compile_context>

<pallas_src>
import jax
import jax.numpy as jnp
from jax.experimental import pallas as pl
from jax.experimental.pallas import tpu as pltpu

_LANE = 128
_SUBLANE = 8
# Conservative per-tile multiplier: 2 inputs + 2 outputs, double buffered (8x),
# plus fp32 intermediates (rec, s before cast) -> ~12 tile-sized live buffers.
_BUF_FACTOR = 12


def _svdd_train_kernel(real_ref, fake_ref, s_ref, c_ref):
    # real_ref/fake_ref/s_ref : (B, TN) or (B, gb, 8, 128); c_ref has leading 1.
    rec = real_ref[...].astype(jnp.float32) - fake_ref[...].astype(jnp.float32)
    c = jnp.mean(rec, axis=0, keepdims=True)          # batch mean (dim=0)
    s_ref[...] = ((rec - c) ** 2).astype(s_ref.dtype)
    c_ref[...] = c.astype(c_ref.dtype)


def _svdd_eval_kernel(real_ref, fake_ref, c_param_ref, s_ref):
    rec = real_ref[...].astype(jnp.float32) - fake_ref[...].astype(jnp.float32)
    c = c_param_ref[...].astype(jnp.float32)          # stored center
    s_ref[...] = ((rec - c) ** 2).astype(s_ref.dtype)


def _vmem_budget_bytes():
    """Half the physical VMEM of the current chip (fallback: v7x-sized)."""
    try:
        cap = int(pltpu.get_tpu_info().vmem_capacity_bytes)
    except Exception:
        cap = 64 * 1024 * 1024
    return cap // 2


def _largest_divisor_at_most(n, cap):
    cap = max(1, min(int(n), int(cap)))
    for d in range(cap, 0, -1):
        if n % d == 0:
            return d
    return 1


def svdd_loss(real_fused, fake_fused, c_param, *, training=True):
    """Pallas implementation of SVDDLoss.forward.

    Returns:
      training=True : (s, c_new) where c_new (float32) is the batch mean of
                      rec — the value PyTorch writes into self.c.data.
      training=False: s
    """
    B, Z = real_fused.shape
    assert fake_fused.shape == (B, Z)
    assert c_param.shape == (Z,)

    in_dtype = real_fused.dtype
    budget = _vmem_budget_bytes()
    total_in_bytes = B * Z * jnp.dtype(in_dtype).itemsize
    # For big problems keep >= 2 grid steps so both v7x TCs get work.
    want_multi_block = total_in_bytes > (2 << 20)

    compiler_params = pltpu.CompilerParams(
        dimension_semantics=("parallel",),
        vmem_limit_bytes=budget,
    )

    densify = (B < _SUBLANE) and (Z % (_SUBLANE * _LANE) == 0)

    if densify:
        # View [B, Z] as [B, G, 8, 128]: dense sublanes/lanes per block even
        # when B < 8.  The reduction axis (batch, axis 0) is untouched.
        g_total = Z // (_SUBLANE * _LANE)
        per_group_bytes = _BUF_FACTOR * B * _SUBLANE * _LANE * 4
        max_g = max(1, budget // per_group_bytes)
        if want_multi_block and g_total >= 2:
            max_g = min(max_g, g_total // 2)
        gb = _largest_divisor_at_most(g_total, max_g)
        grid = (g_total // gb,)

        real_in = real_fused.reshape(B, g_total, _SUBLANE, _LANE)
        fake_in = fake_fused.reshape(B, g_total, _SUBLANE, _LANE)
        c_in = c_param.reshape(1, g_total, _SUBLANE, _LANE)

        io_spec = pl.BlockSpec((B, gb, _SUBLANE, _LANE), lambda j: (0, j, 0, 0))
        c_spec = pl.BlockSpec((1, gb, _SUBLANE, _LANE), lambda j: (0, j, 0, 0))
        s_shape = (B, g_total, _SUBLANE, _LANE)
        c_shape = (1, g_total, _SUBLANE, _LANE)
    else:
        # Plain 2-D layout: batch on sublanes, features on lanes.
        if Z % _LANE == 0:
            n_units = Z // _LANE
            per_unit_bytes = _BUF_FACTOR * B * _LANE * 4
            max_units = max(1, budget // per_unit_bytes)
            if want_multi_block and n_units >= 2:
                max_units = min(max_units, n_units // 2)
            tile_n = _largest_divisor_at_most(n_units, max_units) * _LANE
        else:
            tile_n = Z  # block equals the full feature dim (allowed by Mosaic)
        grid = (Z // tile_n,)

        real_in = real_fused
        fake_in = fake_fused
        c_in = c_param.reshape(1, Z)

        io_spec = pl.BlockSpec((B, tile_n), lambda j: (0, j))
        c_spec = pl.BlockSpec((1, tile_n), lambda j: (0, j))
        s_shape = (B, Z)
        c_shape = (1, Z)

    if training:
        s, c_new = pl.pallas_call(
            _svdd_train_kernel,
            grid=grid,
            in_specs=[io_spec, io_spec],
            out_specs=[io_spec, c_spec],
            out_shape=(
                jax.ShapeDtypeStruct(s_shape, in_dtype),
                jax.ShapeDtypeStruct(c_shape, jnp.float32),
            ),
            compiler_params=compiler_params,
        )(real_in, fake_in)
        return s.reshape(B, Z), c_new.reshape(Z)
    else:
        s = pl.pallas_call(
            _svdd_eval_kernel,
            grid=grid,
            in_specs=[io_spec, io_spec, c_spec],
            out_specs=io_spec,
            out_shape=jax.ShapeDtypeStruct(s_shape, in_dtype),
            compiler_params=compiler_params,
        )(real_in, fake_in, c_in)
        return s.reshape(B, Z)


if __name__ == "__main__":
    key = jax.random.PRNGKey(0)

    # Exercise both layouts: tiny default (single 2-D block) and a
    # densify-eligible shape (Z multiple of 8*128, B < 8).
    for (B, Z) in [(2, 256), (2, 2048)]:
        k1, k2, k3, key = jax.random.split(key, 4)
        real_fused = jax.random.normal(k1, (B, Z), dtype=jnp.float32)
        fake_fused = jax.random.normal(k2, (B, Z), dtype=jnp.float32)
        # Deterministic init of the c parameter (nn.Parameter(torch.Tensor(z_dim))).
        c_param = jax.random.normal(k3, (Z,), dtype=jnp.float32)

        # --- training mode (uses batch mean, returns the new center) ---
        s_train, c_new = svdd_loss(real_fused, fake_fused, c_param, training=True)
        # --- eval mode (uses the stored parameter c) ---
        s_eval = svdd_loss(real_fused, fake_fused, c_param, training=False)
        jax.block_until_ready((s_train, c_new, s_eval))

        # Pure-JAX reference check.
        rec = real_fused - fake_fused
        c_ref = jnp.mean(rec, axis=0)
        s_train_ref = (rec - c_ref) ** 2
        s_eval_ref = (rec - c_param) ** 2

        assert jnp.allclose(s_train, s_train_ref, atol=1e-5, rtol=1e-5)
        assert jnp.allclose(c_new, c_ref, atol=1e-5, rtol=1e-5)
        assert jnp.allclose(s_eval, s_eval_ref, atol=1e-5, rtol=1e-5)

    print("KERNEL_OK")
</pallas_src>

<mosaic_0001>
module attributes {stable_mosaic.version = 11 : i64} {
  func.func @_svdd_train_kernel(%arg0: i32, %arg1: memref<2x256xf32, #tpu.memory_space<vmem>>, %arg2: memref<2x256xf32, #tpu.memory_space<vmem>>, %arg3: memref<2x256xf32, #tpu.memory_space<vmem>>, %arg4: memref<1x256xf32, #tpu.memory_space<vmem>>) attributes {dimension_semantics = [#tpu.dimension_semantics<parallel>], iteration_bounds = array<i64: 1>, scalar_prefetch = 0 : i64, scratch_operands = 0 : i64, tpu.core_type = #tpu.core_type<tc>, window_params = [{transform_indices = @transform_0, window_bounds = array<i64: 2, 256>}, {transform_indices = @transform_1, window_bounds = array<i64: 2, 256>}, {transform_indices = @transform_2, window_bounds = array<i64: 2, 256>}, {transform_indices = @transform_3, window_bounds = array<i64: 1, 256>}]} {
    %c0 = arith.constant 0 : index
    %c0_0 = arith.constant 0 : index
    %0 = vector.load %arg1[%c0, %c0_0] : memref<2x256xf32, #tpu.memory_space<vmem>>, vector<2x256xf32>
    %c0_1 = arith.constant 0 : index
    %c0_2 = arith.constant 0 : index
    %1 = vector.load %arg2[%c0_1, %c0_2] : memref<2x256xf32, #tpu.memory_space<vmem>>, vector<2x256xf32>
    %2 = arith.subf %0, %1 : vector<2x256xf32>
    %cst = arith.constant dense<0.000000e+00> : vector<256xf32>
    %3 = vector.multi_reduction <add>, %2, %cst [0] : vector<2x256xf32> to vector<256xf32>
    %4 = vector.shape_cast %3 : vector<256xf32> to vector<1x256xf32>
    %cst_3 = arith.constant 2.000000e+00 : f32
    %5 = vector.broadcast %cst_3 : f32 to vector<1x256xf32>
    %6 = arith.divf %4, %5 : vector<1x256xf32>
    %7 = vector.broadcast %6 : vector<1x256xf32> to vector<2x256xf32>
    %8 = arith.subf %2, %7 : vector<2x256xf32>
    %9 = arith.mulf %8, %8 : vector<2x256xf32>
    %c0_4 = arith.constant 0 : index
    %c0_5 = arith.constant 0 : index
    %10 = vector.load %arg3[%c0_4, %c0_5] : memref<2x256xf32, #tpu.memory_space<vmem>>, vector<2x256xf32>
    tpu.vector_store %arg3[%c0_4, %c0_5], %9 {strides = array<i32>} : memref<2x256xf32, #tpu.memory_space<vmem>>, vector<2x256xf32>,
    %c0_6 = arith.constant 0 : index
    %c0_7 = arith.constant 0 : index
    %11 = vector.load %arg4[%c0_6, %c0_7] : memref<1x256xf32, #tpu.memory_space<vmem>>, vector<1x256xf32>
    tpu.vector_store %arg4[%c0_6, %c0_7], %6 {strides = array<i32>} : memref<1x256xf32, #tpu.memory_space<vmem>>, vector<1x256xf32>,
    return
  }
  func.func @transform_0(%arg0: i32) -> (i32, i32) {
    %c0_i32 = arith.constant 0 : i32
    %c0_i32_0 = arith.constant 0 : i32
    return %c0_i32, %arg0 : i32, i32
  }
  func.func @transform_1(%arg0: i32) -> (i32, i32) {
    %c0_i32 = arith.constant 0 : i32
    %c0_i32_0 = arith.constant 0 : i32
    return %c0_i32, %arg0 : i32, i32
  }
  func.func @transform_2(%arg0: i32) -> (i32, i32) {
    %c0_i32 = arith.constant 0 : i32
    %c0_i32_0 = arith.constant 0 : i32
    return %c0_i32, %arg0 : i32, i32
  }
  func.func @transform_3(%arg0: i32) -> (i32, i32) {
    %c0_i32 = arith.constant 0 : i32
    %c0_i32_0 = arith.constant 0 : i32
    return %c0_i32, %arg0 : i32, i32
  }
}

</mosaic_0001>

<bundles_post_ra>
// kernel: tpu_custom_call.1
= control target key start
LH: loop header
LB: loop body
LE: loop exit
PB: predicated region body
PF: predicated region fallthrough
CT: control target
= control target key end

     0   :  { %9 = vsyncpa [#allocation3], 0  ;;  %s311_s0 = inlined_call_operand.hbm [shape: f32[2,256], index: 0, kind: input, shape index: {}]   ;;  %s312_s1 = inlined_call_operand.hbm [shape: f32[2,256], index: 1, kind: input, shape index: {}]   ;;  %s313_s2 = inlined_call_operand.hbm [shape: f32[2,256], index: 2, kind: output, shape index: {0}]   ;;  %s314_s3 = inlined_call_operand.hbm [shape: f32[1,256], index: 3, kind: output, shape index: {1}]  }
   0x1   :  { %10 = vsyncpa [#allocation6], 0 }
   0x2   :  { %11 = vsyncpa [#allocation4], 0 }
   0x3   :  { %12 = vsyncpa [#allocation9], 0  ;;  %s237_s12 = smov [#allocation2]   ;;  %s238_s14 = smov [#allocation5]  }
   0x4   :  { %s19_s13 = sshll.u32 %s237_s12, 4  ;;  %s29_s15 = sshll.u32 %s238_s14, 4  ;;  %s20_s13 = int_to_ptr.vmem [resolvable:$true] %s19_s13  ;;  %s30_s15 = int_to_ptr.vmem [resolvable:$true] %s29_s15 }
   0x5   :  { %s141_s18 = scalar_lea.hbm %s311_s0, 64 }
   0x6   :  { %p142_p0 = scmp.ne.s32.totalorder %s311_s0, %s141_s18  ;;  %p145_p1 = scmp.lt.u32.totalorder %s141_s18, %s311_s0 }
   0x8   :  { %p147_p2 = pnand %p145_p1, %p142_p0 }
   0xa   :  { %150 = shalt.err (!%p147_p2)
}
   0xb   :  { %s151_s23 = scalar_lea.vmem %s20_s13, 64  ;;  %p156_p4 = scmp.lt.s32.totalorder %s20_s13, %s20_s13 }
   0xc   :  { %p152_p3 = scmp.ne.s32.totalorder %s20_s13, %s151_s23  ;;  %p157_p5 = scmp.lt.s32.totalorder %s151_s23, %s151_s23 }
   0xe   :  { %p158_p6 = por %p157_p5, %p156_p4 }
  0x10   :  { %p159_p7 = pnand %p158_p6, %p152_p3 }
  0x12   :  { %162 = shalt.err (!%p159_p7)
}
  0x13   :  { %22 = dma.hbm_to_vmem [thread:$0]  %s311_s0, 64, %s20_s13, [#allocation3]  }
  0x14   :  { %s163_s28 = scalar_lea.hbm %s312_s1, 64 }
  0x15   :  { %p164_p8 = scmp.ne.s32.totalorder %s312_s1, %s163_s28  ;;  %p167_p9 = scmp.lt.u32.totalorder %s163_s28, %s312_s1 }
  0x17   :  { %p169_p10 = pnand %p167_p9, %p164_p8 }
  0x19   :  { %172 = shalt.err (!%p169_p10)
}
  0x1a   :  { %s173_s6 = scalar_lea.vmem %s30_s15, 64  ;;  %p178_p12 = scmp.lt.s32.totalorder %s30_s15, %s30_s15 }
  0x1b   :  { %p174_p11 = scmp.ne.s32.totalorder %s30_s15, %s173_s6  ;;  %p179_p13 = scmp.lt.s32.totalorder %s173_s6, %s173_s6 }
  0x1d   :  { %p180_p0 = por %p179_p13, %p178_p12 }
  0x1f   :  { %p181_p1 = pnand %p180_p0, %p174_p11 }
  0x21   :  { %184 = shalt.err (!%p181_p1)
}
  0x22   :  { %32 = dma.hbm_to_vmem [thread:$0]  %s312_s1, 64, %s30_s15, [#allocation6]  }
  0x23   :  { %229 = dma.done.wait [#allocation3], 64  }
  0x24   :  { %230 = vsyncadd [#allocation3], 4294967232 }
  0x25   :  { %231 = dma.done.wait [#allocation6], 64  }
  0x26   :  { %232 = vsyncadd [#allocation6], 4294967232  ;;  %v46_v0 = vlaneseq  ;;  %v239_v1 = vmov 1983009808   ;;  %v39_v6 = vld [vmem:[#allocation2] sm:$0xf] }
  0x27   :  { %v44_v2 = vunpack.c.l.s4 %v239_v1  ;;  %v40_v7 = vld [vmem:[#allocation5] sm:$0xf]  ;;  %vm53_vm0 = vcmask 1041408   ;;  %v240_v20 = vmov 1966171168   ;;  %s241_s1 = smov [#allocation8]  }
  0x28   :  { %v47_v3 = vshrl.u32 %v46_v0, 7  ;;  %v41_v8 = vsub.f32 %v39_v6, %v40_v7  ;;  %v86_v21 = vunpack.c.l.s4 %v240_v20  ;;  %s121_s8 = sshll.u32 %s241_s1, 4  ;;  %vm102_vm1 = vcmp.lt.s32.totalorder %v46_v0, 256  ;;  %s242_s9 = smov [#allocation7]   ;;  %s122_s8 = int_to_ptr.vmem [resolvable:$true] %s121_s8 }
  0x29   :  { %v45_v4 = vunpack.c.0.s8 %v44_v2  ;;  %s111_s10 = sshll.u32 %s242_s9, 4  ;;  %s185_s11 = scalar_lea.vmem %s122_s8, 32  ;;  %s112_s10 = int_to_ptr.vmem [resolvable:$true] %s111_s10 }
  0x2a   :  { %v87_v26 = vunpack.c.0.s8 %v86_v21  ;;  %p186_p2 = scmp.ne.s32.totalorder %s122_s8, %s185_s11  ;;  %p190_p3 = scmp.lt.s32.totalorder %s122_s8, %s122_s8 }
  0x2b   :  { %v48_v5 = vsub.s32 %v45_v4, %v47_v3  ;;  %p191_p4 = scmp.lt.s32.totalorder %s185_s11, %s185_s11 }
  0x2c   :  { %v90_v30 = vsub.s32 %v87_v26, %v47_v3 }
  0x2d   :  { %v49_v9 = vrot.slane %v41_v8, %v48_v5  ;;  %p192_p5 = por %p191_p4, %p190_p3 }
  0x2f   :  { %v50_v10 = vcombine.high %v49_v9, %v49_v9  ;;  %v54_v11 = vsel %vm53_vm0, %v49_v9, 0.0  ;;  %p193_p6 = pnand %p192_p5, %p186_p2 }
  0x30   :  { %v55_v12 = vrot.slane %v54_v11, 4 }
  0x31   :  { %v61_v13 = vsel %vm53_vm0, %v50_v10, 0.0 }
  0x32   :  { %v56_v14 = vadd.f32 %v55_v12, %v54_v11  ;;  %v62_v15 = vrot.slane %v61_v13, 4 }
  0x34   :  { %v57_v16 = vrot.slane %v56_v14, 2  ;;  %v63_v17 = vadd.f32 %v62_v15, %v61_v13 }
  0x36   :  { %v58_v18 = vadd.f32 %v57_v16, %v56_v14  ;;  %v64_v19 = vrot.slane %v63_v17, 2 }
  0x38   :  { %v59_v22 = vrot.slane %v58_v18, 1  ;;  %v65_v23 = vadd.f32 %v64_v19, %v63_v17 }
  0x3a   :  { %v60_v24 = vadd.f32 %v59_v22, %v58_v18  ;;  %v66_v25 = vrot.slane %v65_v23, 1 }
  0x3c   :  { %v67_v27 = vadd.f32 %v66_v25, %v65_v23  ;;  %v69_v28 = vmul.f32 0.5, %v60_v24 }
  0x3e   :  { %v70_v29 = vmul.f32 0.5, %v67_v27 }
  0x40   :  { %v73_v31 = vcombine.low %v69_v28, %v70_v29 }
  0x42   :  { %v80_v32 = vrot.slane %v73_v31, %v48_v5  ;;  %v91_v33 = vrot.slane %v73_v31, %v90_v30 }
  0x44   :  { %v82_v34 = vsub.f32 %v41_v8, %v80_v32  ;;  %v98_v35 = vrot.slane %v91_v33, %v90_v30 }
  0x46   :  { %v83_v36 = vmul.f32 %v82_v34, %v82_v34  ;;  %104 = vst.msk [vmem:[#allocation8] sm:$0x3] %vm102_vm1, %v98_v35 }
  0x47   :  { %196 = shalt.err (!%p193_p6)
}
  0x48   :  { %s197_s14 = scalar_lea.hbm %s314_s3, 32 }
  0x49   :  { %p198_p7 = scmp.ne.s32.totalorder %s314_s3, %s197_s14  ;;  %p201_p8 = scmp.lt.u32.totalorder %s197_s14, %s314_s3 }
  0x4b   :  { %p203_p9 = pnand %p201_p8, %p198_p7 }
  0x4d   :  { %206 = shalt.err (!%p203_p9)
}
  0x4e   :  { %124 = dma.vmem_to_hbm [thread:$0]  %s122_s8, 32, %s314_s3, [#allocation9]   ;;  %84 = vst [vmem:[#allocation7] sm:$0xf] %v83_v36 }
  0x4f   :  { %s207_s21 = scalar_lea.vmem %s112_s10, 64  ;;  %p212_p11 = scmp.lt.s32.totalorder %s112_s10, %s112_s10 }
  0x50   :  { %p208_p10 = scmp.ne.s32.totalorder %s112_s10, %s207_s21  ;;  %p213_p12 = scmp.lt.s32.totalorder %s207_s21, %s207_s21 }
  0x52   :  { %p214_p13 = por %p213_p12, %p212_p11 }
  0x54   :  { %p215_p0 = pnand %p214_p13, %p208_p10 }
  0x56   :  { %218 = shalt.err (!%p215_p0)
}
  0x57   :  { %s219_s24 = scalar_lea.hbm %s313_s2, 64 }
  0x58   :  { %p220_p1 = scmp.ne.s32.totalorder %s313_s2, %s219_s24  ;;  %p223_p2 = scmp.lt.u32.totalorder %s219_s24, %s313_s2 }
  0x5a   :  { %p225_p3 = pnand %p223_p2, %p220_p1 }
  0x5c   :  { %228 = shalt.err (!%p225_p3)
}
  0x5d   :  { %114 = dma.vmem_to_hbm [thread:$0]  %s112_s10, 64, %s313_s2, [#allocation4]  }
  0x5e   :  { %233 = dma.done.wait [#allocation4], 64  }
  0x5f   :  { %234 = vsyncadd [#allocation4], 4294967232 }
  0x60   :  { %235 = dma.done.wait [#allocation9], 32  }
  0x61   :  { %236 = vsyncadd [#allocation9], 4294967264 }
  0x62   :  { %131 = vsyncpa [#allocation3], 1 }
  0x63   :  { %132 = vsyncpa [#allocation6], 1 }
  0x64   :  { %133 = vsyncpa [#allocation4], 1 }
  0x65   :  { %134 = vsyncpa [#allocation9], 1 }

</bundles_post_ra>
